<compile_context>
chip_gen: v7x
topology: tpu7x:2x2x1
jax: 0.10.0
libtpu: 0.0.40
codegen_flags: <defaults>
</compile_context>

<pallas_src>
import functools
import math

import jax
import jax.numpy as jnp
from jax.experimental import pallas as pl
from jax.experimental.pallas import tpu as pltpu


def _ffn_kernel(x_ref, w1_ref, b1_ref, w2_ref, b2_ref, g_ref, beta_ref,
                o_ref, acc_ref, *, eps):
    k = pl.program_id(1)

    @pl.when(k == 0)
    def _():
        acc_ref[...] = jnp.zeros_like(acc_ref)

    # --- Linear(emb_size, d_ff) + ReLU on this d_ff slab -------------------
    # Native-dtype operands (bf16-ready), f32 accumulation on the MXU.
    x = x_ref[...]
    h = jnp.dot(x, w1_ref[...], preferred_element_type=jnp.float32)
    h = jnp.maximum(h + b1_ref[...].astype(jnp.float32), 0.0)
    # TODO(synk): nn.Dropout omitted — forward implemented in eval/inference mode (identity).

    # --- Linear(d_ff, emb_size): accumulate slab contribution in f32 -------
    # Cast the activation back to the weight dtype so matmul #2 stays at
    # native MXU rate and halves the (tm, tf) intermediate footprint.
    acc_ref[...] += jnp.dot(h.astype(w2_ref.dtype), w2_ref[...],
                            preferred_element_type=jnp.float32)

    # --- Residual + LayerNorm(eps=1e-6) epilogue, once per row tile --------
    @pl.when(k == pl.num_programs(1) - 1)
    def _():
        v = acc_ref[...] + b2_ref[...].astype(jnp.float32) + x.astype(jnp.float32)
        mean = jnp.mean(v, axis=-1, keepdims=True)
        cent = v - mean
        var = jnp.mean(cent * cent, axis=-1, keepdims=True)
        scale = jax.lax.rsqrt(var + eps) * g_ref[...].astype(jnp.float32)
        o_ref[...] = (cent * scale + beta_ref[...].astype(jnp.float32)).astype(o_ref.dtype)


def position_wise_ffn_forward(x, w1, b1, w2, b2, gamma, beta, *,
                              eps=1e-6, tile_m=256, tile_f=2048):
    """x: (B, S, E). w1: (E, d_ff), b1: (d_ff,), w2: (d_ff, E), b2/gamma/beta: (E,)."""
    B, S, E = x.shape
    d_ff = w1.shape[1]
    assert w1.shape == (E, d_ff) and w2.shape == (d_ff, E)
    assert b1.shape == (d_ff,) and b2.shape == (E,)
    assert gamma.shape == (E,) and beta.shape == (E,)

    M = B * S
    xf = x.reshape(M, E)

    # Row tile: multiple of 8 (or full M). Guarantee >= 2 row-grid steps when
    # possible so the "parallel" axis actually splits across both v7x cores.
    tm = min(tile_m, M)
    if pl.cdiv(M, tm) < 2 and M >= 16:
        tm = max(8, (((M + 1) // 2) + 7) // 8 * 8)
    nm = pl.cdiv(M, tm)

    # d_ff reduction tile: either the full d_ff, or a multiple of 128 that
    # divides it exactly (no ragged reduction blocks -> no garbage in the sum).
    if d_ff <= tile_f:
        tf = d_ff
    elif d_ff % tile_f == 0:
        tf = tile_f
    else:
        tf = d_ff
        for cand in range(tile_f - (tile_f % 128), 127, -128):
            if d_ff % cand == 0:
                tf = cand
                break
    nk = d_ff // tf

    # 2-D parameter layouts (lane axis last) for clean TPU tiling.
    b1_2d = b1.reshape(1, d_ff)
    b2_2d = b2.reshape(1, E)
    g_2d = gamma.reshape(1, E)
    beta_2d = beta.reshape(1, E)

    # Scoped-VMEM budget from the actual per-step footprint (+50% headroom),
    # clamped to [32 MiB, 48 MiB] — above every generation's default, below
    # v7x's 64 MiB physical VMEM.
    x_item = jnp.dtype(x.dtype).itemsize
    w_item = jnp.dtype(w1.dtype).itemsize
    vmem_est = (
        2 * tm * E * x_item                       # x tile (double-buffered)
        + 2 * tm * E * x_item                     # out tile (double-buffered)
        + 2 * (E * tf + tf * E + tf) * w_item     # W1 / W2 / b1 slabs (double-buffered)
        + 3 * 8 * max(E, 128) * 4                 # b2 / gamma / beta (padded tiles)
        + tm * E * 4                              # f32 accumulator scratch
        + tm * tf * (4 + w_item)                  # h (f32) + its narrow cast
    )
    vmem_limit = int(min(max(vmem_est * 3 // 2, 32 * 1024 * 1024),
                         48 * 1024 * 1024))

    cost = pl.CostEstimate(
        flops=4 * M * E * d_ff,
        transcendentals=M,
        bytes_accessed=int(xf.nbytes + M * E * x_item
                           + nm * (w1.nbytes + w2.nbytes + b1.nbytes)
                           + b2.nbytes + gamma.nbytes + beta.nbytes),
    )

    out = pl.pallas_call(
        functools.partial(_ffn_kernel, eps=eps),
        out_shape=jax.ShapeDtypeStruct((M, E), x.dtype),
        grid_spec=pltpu.PrefetchScalarGridSpec(
            num_scalar_prefetch=0,
            grid=(nm, nk),
            in_specs=[
                pl.BlockSpec((tm, E), lambda i, k: (i, 0)),   # x rows (resident across k)
                pl.BlockSpec((E, tf), lambda i, k: (0, k)),   # W1 column slab (streamed)
                pl.BlockSpec((1, tf), lambda i, k: (0, k)),   # b1 slab
                pl.BlockSpec((tf, E), lambda i, k: (k, 0)),   # W2 row slab (streamed)
                pl.BlockSpec((1, E), lambda i, k: (0, 0)),    # b2
                pl.BlockSpec((1, E), lambda i, k: (0, 0)),    # gamma
                pl.BlockSpec((1, E), lambda i, k: (0, 0)),    # beta
            ],
            out_specs=pl.BlockSpec((tm, E), lambda i, k: (i, 0)),
            scratch_shapes=[pltpu.VMEM((tm, E), jnp.float32)],
        ),
        compiler_params=pltpu.CompilerParams(
            dimension_semantics=("parallel", "arbitrary"),
            vmem_limit_bytes=vmem_limit,
        ),
        cost_estimate=cost,
    )(xf, w1, b1_2d, w2, b2_2d, g_2d, beta_2d)

    return out.reshape(B, S, E)


def _reference(x, w1, b1, w2, b2, gamma, beta, eps=1e-6):
    # Pure-JAX reference replicating the PyTorch module in eval mode.
    h = jnp.maximum(x @ w1 + b1, 0.0)
    z = h @ w2 + b2
    v = z + x
    mean = jnp.mean(v, axis=-1, keepdims=True)
    var = jnp.mean((v - mean) ** 2, axis=-1, keepdims=True)
    return (v - mean) / jnp.sqrt(var + eps) * gamma + beta


if __name__ == "__main__":
    B, S, E, d_ff = 2, 8, 32, 64

    key = jax.random.PRNGKey(0)
    kx, k1, k2, k3, k4, k5, k6 = jax.random.split(key, 7)

    x = jax.random.normal(kx, (B, S, E), dtype=jnp.float32)
    w1 = jax.random.normal(k1, (E, d_ff), dtype=jnp.float32) * (1.0 / math.sqrt(E))
    b1 = jax.random.normal(k2, (d_ff,), dtype=jnp.float32) * 0.1
    w2 = jax.random.normal(k3, (d_ff, E), dtype=jnp.float32) * (1.0 / math.sqrt(d_ff))
    b2 = jax.random.normal(k4, (E,), dtype=jnp.float32) * 0.1
    gamma = 1.0 + 0.1 * jax.random.normal(k5, (E,), dtype=jnp.float32)
    beta = 0.1 * jax.random.normal(k6, (E,), dtype=jnp.float32)

    out = position_wise_ffn_forward(x, w1, b1, w2, b2, gamma, beta)
    out = jax.block_until_ready(out)

    ref = _reference(x, w1, b1, w2, b2, gamma, beta)
    assert out.shape == (B, S, E), out.shape
    assert jnp.allclose(out, ref, atol=2e-5, rtol=2e-5), "mismatch vs reference"

    print("KERNEL_OK")
</pallas_src>

<mosaic_0001>
module attributes {stable_mosaic.version = 11 : i64} {
  func.func @_ffn_kernel(%arg0: i32, %arg1: i32, %arg2: memref<8x32xf32, #tpu.memory_space<vmem>>, %arg3: memref<32x64xf32, #tpu.memory_space<vmem>>, %arg4: memref<1x64xf32, #tpu.memory_space<vmem>>, %arg5: memref<64x32xf32, #tpu.memory_space<vmem>>, %arg6: memref<1x32xf32, #tpu.memory_space<vmem>>, %arg7: memref<1x32xf32, #tpu.memory_space<vmem>>, %arg8: memref<1x32xf32, #tpu.memory_space<vmem>>, %arg9: memref<8x32xf32, #tpu.memory_space<vmem>>, %arg10: memref<8x32xf32, #tpu.memory_space<vmem>>) attributes {dimension_semantics = [#tpu.dimension_semantics<parallel>, #tpu.dimension_semantics<arbitrary>], iteration_bounds = array<i64: 2, 1>, scalar_prefetch = 0 : i64, scratch_operands = 1 : i64, tpu.core_type = #tpu.core_type<tc>, window_params = [{transform_indices = @transform_0, window_bounds = array<i64: 8, 32>}, {transform_indices = @transform_1, window_bounds = array<i64: 32, 64>}, {transform_indices = @transform_2, window_bounds = array<i64: 1, 64>}, {transform_indices = @transform_3, window_bounds = array<i64: 64, 32>}, {pipeline_mode = #tpu.pipeline_mode<synchronous>, transform_indices = @transform_4, window_bounds = array<i64: 1, 32>}, {pipeline_mode = #tpu.pipeline_mode<synchronous>, transform_indices = @transform_5, window_bounds = array<i64: 1, 32>}, {pipeline_mode = #tpu.pipeline_mode<synchronous>, transform_indices = @transform_6, window_bounds = array<i64: 1, 32>}, {transform_indices = @transform_7, window_bounds = array<i64: 8, 32>}]} {
    %c0_i32 = arith.constant 0 : i32
    %0 = arith.cmpi eq, %arg1, %c0_i32 : i32
    %1 = arith.extui %0 : i1 to i32
    %c0_i32_0 = arith.constant 0 : i32
    %2 = arith.cmpi ne, %1, %c0_i32_0 : i32
    scf.if %2 {
      %cst_16 = arith.constant 0.000000e+00 : f32
      %19 = vector.broadcast %cst_16 : f32 to vector<8x32xf32>
      %c0_17 = arith.constant 0 : index
      %c0_18 = arith.constant 0 : index
      %20 = vector.load %arg10[%c0_17, %c0_18] : memref<8x32xf32, #tpu.memory_space<vmem>>, vector<8x32xf32>
      tpu.vector_store %arg10[%c0_17, %c0_18], %19 {strides = array<i32>} : memref<8x32xf32, #tpu.memory_space<vmem>>, vector<8x32xf32>,
    } else {
    }
    %c0 = arith.constant 0 : index
    %c0_1 = arith.constant 0 : index
    %3 = vector.load %arg2[%c0, %c0_1] : memref<8x32xf32, #tpu.memory_space<vmem>>, vector<8x32xf32>
    %c0_2 = arith.constant 0 : index
    %c0_3 = arith.constant 0 : index
    %4 = vector.load %arg3[%c0_2, %c0_3] : memref<32x64xf32, #tpu.memory_space<vmem>>, vector<32x64xf32>
    %cst = arith.constant dense<0.000000e+00> : vector<8x64xf32>
    %5 = tpu.matmul %3, %4, %cst {dimension_numbers = #tpu.dot_dimension_numbers<[1], [0], [0], [1], [0, 0, 1, 1], [], []>} : vector<8x32xf32>, vector<32x64xf32>, vector<8x64xf32> -> vector<8x64xf32>
    %c0_4 = arith.constant 0 : index
    %c0_5 = arith.constant 0 : index
    %6 = vector.load %arg4[%c0_4, %c0_5] : memref<1x64xf32, #tpu.memory_space<vmem>>, vector<1x64xf32>
    %7 = vector.broadcast %6 : vector<1x64xf32> to vector<8x64xf32>
    %8 = arith.addf %5, %7 : vector<8x64xf32>
    %cst_6 = arith.constant 0.000000e+00 : f32
    %9 = vector.broadcast %cst_6 : f32 to vector<8x64xf32>
    %10 = arith.maximumf %8, %9 : vector<8x64xf32>
    %c0_7 = arith.constant 0 : index
    %c0_8 = arith.constant 0 : index
    %11 = vector.load %arg10[%c0_7, %c0_8] : memref<8x32xf32, #tpu.memory_space<vmem>>, vector<8x32xf32>
    %c0_9 = arith.constant 0 : index
    %c0_10 = arith.constant 0 : index
    %12 = vector.load %arg5[%c0_9, %c0_10] : memref<64x32xf32, #tpu.memory_space<vmem>>, vector<64x32xf32>
    %cst_11 = arith.constant dense<0.000000e+00> : vector<8x32xf32>
    %13 = tpu.matmul %10, %12, %cst_11 {dimension_numbers = #tpu.dot_dimension_numbers<[1], [0], [0], [1], [0, 0, 1, 1], [], []>} : vector<8x64xf32>, vector<64x32xf32>, vector<8x32xf32> -> vector<8x32xf32>
    %14 = arith.addf %11, %13 : vector<8x32xf32>
    %c0_12 = arith.constant 0 : index
    %c0_13 = arith.constant 0 : index
    %15 = vector.load %arg10[%c0_12, %c0_13] : memref<8x32xf32, #tpu.memory_space<vmem>>, vector<8x32xf32>
    tpu.vector_store %arg10[%c0_12, %c0_13], %14 {strides = array<i32>} : memref<8x32xf32, #tpu.memory_space<vmem>>, vector<8x32xf32>,
    %c0_i32_14 = arith.constant 0 : i32
    %16 = arith.cmpi eq, %arg1, %c0_i32_14 : i32
    %17 = arith.extui %16 : i1 to i32
    %c0_i32_15 = arith.constant 0 : i32
    %18 = arith.cmpi ne, %17, %c0_i32_15 : i32
    scf.if %18 {
      %c0_16 = arith.constant 0 : index
      %c0_17 = arith.constant 0 : index
      %19 = vector.load %arg10[%c0_16, %c0_17] : memref<8x32xf32, #tpu.memory_space<vmem>>, vector<8x32xf32>
      %c0_18 = arith.constant 0 : index
      %c0_19 = arith.constant 0 : index
      %20 = vector.load %arg6[%c0_18, %c0_19] : memref<1x32xf32, #tpu.memory_space<vmem>>, vector<1x32xf32>
      %21 = vector.broadcast %20 : vector<1x32xf32> to vector<8x32xf32>
      %22 = arith.addf %19, %21 : vector<8x32xf32>
      %23 = arith.addf %22, %3 : vector<8x32xf32>
      %cst_20 = arith.constant dense<0.000000e+00> : vector<8xf32>
      %24 = vector.multi_reduction <add>, %23, %cst_20 [1] : vector<8x32xf32> to vector<8xf32>
      %25 = vector.shape_cast %24 : vector<8xf32> to vector<8x1xf32>
      %cst_21 = arith.constant 3.200000e+01 : f32
      %26 = vector.broadcast %cst_21 : f32 to vector<8x1xf32>
      %27 = arith.divf %25, %26 : vector<8x1xf32>
      %28 = vector.broadcast %27 : vector<8x1xf32> to vector<8x32xf32>
      %29 = arith.subf %23, %28 : vector<8x32xf32>
      %30 = arith.mulf %29, %29 : vector<8x32xf32>
      %cst_22 = arith.constant dense<0.000000e+00> : vector<8xf32>
      %31 = vector.multi_reduction <add>, %30, %cst_22 [1] : vector<8x32xf32> to vector<8xf32>
      %32 = vector.shape_cast %31 : vector<8xf32> to vector<8x1xf32>
      %cst_23 = arith.constant 3.200000e+01 : f32
      %33 = vector.broadcast %cst_23 : f32 to vector<8x1xf32>
      %34 = arith.divf %32, %33 : vector<8x1xf32>
      %cst_24 = arith.constant 9.99999997E-7 : f32
      %35 = vector.broadcast %cst_24 : f32 to vector<8x1xf32>
      %36 = arith.addf %34, %35 : vector<8x1xf32>
      %37 = math.rsqrt %36 : vector<8x1xf32>
      %c0_25 = arith.constant 0 : index
      %c0_26 = arith.constant 0 : index
      %38 = vector.load %arg7[%c0_25, %c0_26] : memref<1x32xf32, #tpu.memory_space<vmem>>, vector<1x32xf32>
      %39 = vector.broadcast %37 : vector<8x1xf32> to vector<8x32xf32>
      %40 = vector.broadcast %38 : vector<1x32xf32> to vector<8x32xf32>
      %41 = arith.mulf %39, %40 : vector<8x32xf32>
      %42 = arith.mulf %29, %41 : vector<8x32xf32>
      %c0_27 = arith.constant 0 : index
      %c0_28 = arith.constant 0 : index
      %43 = vector.load %arg8[%c0_27, %c0_28] : memref<1x32xf32, #tpu.memory_space<vmem>>, vector<1x32xf32>
      %44 = vector.broadcast %43 : vector<1x32xf32> to vector<8x32xf32>
      %45 = arith.addf %42, %44 : vector<8x32xf32>
      %c0_29 = arith.constant 0 : index
      %c0_30 = arith.constant 0 : index
      %46 = vector.load %arg9[%c0_29, %c0_30] : memref<8x32xf32, #tpu.memory_space<vmem>>, vector<8x32xf32>
      tpu.vector_store %arg9[%c0_29, %c0_30], %45 {strides = array<i32>} : memref<8x32xf32, #tpu.memory_space<vmem>>, vector<8x32xf32>,
    } else {
    }
    return
  }
  func.func @transform_0(%arg0: i32, %arg1: i32) -> (i32, i32) {
    %c0_i32 = arith.constant 0 : i32
    %c0_i32_0 = arith.constant 0 : i32
    return %arg0, %c0_i32 : i32, i32
  }
  func.func @transform_1(%arg0: i32, %arg1: i32) -> (i32, i32) {
    %c0_i32 = arith.constant 0 : i32
    %c0_i32_0 = arith.constant 0 : i32
    return %c0_i32, %arg1 : i32, i32
  }
  func.func @transform_2(%arg0: i32, %arg1: i32) -> (i32, i32) {
    %c0_i32 = arith.constant 0 : i32
    %c0_i32_0 = arith.constant 0 : i32
    return %c0_i32, %arg1 : i32, i32
  }
  func.func @transform_3(%arg0: i32, %arg1: i32) -> (i32, i32) {
    %c0_i32 = arith.constant 0 : i32
    %c0_i32_0 = arith.constant 0 : i32
    return %arg1, %c0_i32 : i32, i32
  }
  func.func @transform_4(%arg0: i32, %arg1: i32) -> (i32, i32) {
    %c0_i32 = arith.constant 0 : i32
    %c0_i32_0 = arith.constant 0 : i32
    %c0_i32_1 = arith.constant 0 : i32
    return %c0_i32, %c0_i32_0 : i32, i32
  }
  func.func @transform_5(%arg0: i32, %arg1: i32) -> (i32, i32) {
    %c0_i32 = arith.constant 0 : i32
    %c0_i32_0 = arith.constant 0 : i32
    %c0_i32_1 = arith.constant 0 : i32
    return %c0_i32, %c0_i32_0 : i32, i32
  }
  func.func @transform_6(%arg0: i32, %arg1: i32) -> (i32, i32) {
    %c0_i32 = arith.constant 0 : i32
    %c0_i32_0 = arith.constant 0 : i32
    %c0_i32_1 = arith.constant 0 : i32
    return %c0_i32, %c0_i32_0 : i32, i32
  }
  func.func @transform_7(%arg0: i32, %arg1: i32) -> (i32, i32) {
    %c0_i32 = arith.constant 0 : i32
    %c0_i32_0 = arith.constant 0 : i32
    return %arg0, %c0_i32 : i32, i32
  }
}

</mosaic_0001>

<bundles_post_ra>
// kernel: tpu_custom_call.1
= control target key start
LH: loop header
LB: loop body
LE: loop exit
PB: predicated region body
PF: predicated region fallthrough
CT: control target
= control target key end

     0   :  { %12 = vsyncpa [#allocation4], 0  ;;  %s1116_s0 = inlined_call_operand.vmem [shape: f32[16,32], index: 0, kind: input, shape index: {}]   ;;  %s1117_s1 = inlined_call_operand.vmem [shape: f32[32,64], index: 1, kind: input, shape index: {}]   ;;  %s1118_s2 = inlined_call_operand.vmem [shape: f32[1,64], index: 2, kind: input, shape index: {}]   ;;  %s1119_s3 = inlined_call_operand.vmem [shape: f32[64,32], index: 3, kind: input, shape index: {}]   ;;  %s1120_s4 = inlined_call_operand.vmem [shape: f32[1,32], index: 4, kind: input, shape index: {}]   ;;  %s1121_s5 = inlined_call_operand.vmem [shape: f32[1,32], index: 5, kind: input, shape index: {}]   ;;  %s1122_s6 = inlined_call_operand.vmem [shape: f32[1,32], index: 6, kind: input, shape index: {}]   ;;  %s1123_s7 = inlined_call_operand.hbm [shape: f32[16,32], index: 7, kind: output, shape index: {}]  }
   0x1   :  { %14 = vsyncpa [#allocation4 + $0x1], 0  ;;  %s950_s24 = smov 0   ;;  %s952_s25 = smov 0  }
   0x2   :  { %s954_s26 = smov 0   ;;  %s956_s27 = smov 0  }
   0x3   :  { %s958_s28 = smov 0   ;;  %s960_s29 = smov 0  }
   0x4 LB: > { %s684_s30 = sadd.s32 4294967295, %s904_s29   ;;  %s685_s8 = sadd.s32 4294967294, %s904_s29   ;;  %s904_s29 = sphi %s960_s29, %s20_s29   ;;  %s900_s28 = sphi %s958_s28, %s1130_s28   ;;  %s896_s27 = sphi %s956_s27, %s1129_s27   ;;  %s892_s26 = sphi %s954_s26, %s1128_s26   ;;  %s888_s25 = sphi %s952_s25, %s1127_s25   ;;  %s884_s24 = sphi %s950_s24, %s1126_s24  }
   0x5   : > { %s32_s9 = sadd.s32 1, %s900_s28  ;;  %s206_s10 = sadd.s32 1, %s892_s26 }
   0x6   : > { %p34_p0 = scmp.ge.s32.totalorder %s32_s9, 2  ;;  %p216_p1 = scmp.ne.s32.totalorder %s892_s26, %s888_s25 }
   0x7   : > { %p217_p2 = scmp.eq.s32.totalorder %s684_s30, 1  ;;  %p222_p3 = scmp.ne.s32.totalorder %s888_s25, %s884_s24 }
   0x8   : > { %s1132_s9 = smov (%p34_p0, %s32_s9), 0  ;;  %p223_p5 = scmp.eq.s32.totalorder %s685_s8, 1 }
   0x9   : > { %p990_p4 = por %p217_p2, %p216_p1  ;;  %s203_s12 = ssub.s32 %s900_s28, %s1132_s9 }
   0xa   : > { %p691_p6 = scmp.ge.s32.totalorder %s904_s29, 1  ;;  %p204_p7 = scmp.eq.s32.totalorder %s203_s12, 0 }
   0xb   : > { %p997_p8 = por %p223_p5, %p222_p3  ;;  %p279_p9 = scmp.lt.s32.totalorder %s904_s29, 3 }
   0xc   : > { %s1003_s14 = scalar_select %p204_p7, %s892_s26, %s206_s10  }
   0xd   : > { %p280_p10 = pnand %p691_p6, %p279_p9 }
   0xe   : > { %v346_v0 = vld [vmem:[%s1117_s1] sm:$0xff] (!%p280_p10)  ;;  %v347_v1 = vld [vmem:[%s1117_s1 + $0x8] sm:$0xff] (!%p280_p10)  ;;  %v348_v2 = vld [vmem:[%s1117_s1 + $0x10] sm:$0xff] (!%p280_p10)  ;;  %vm343_vm0 = vcmask (!%p280_p10), 261120   ;;  %v906_v3 = vmov (!%p280_p10), 0.0|0.0   ;;  %v907_v6 = vmov (!%p280_p10), 0.0  }
   0xf   : > { %283 = sbr.rel (%p280_p10) target bundleno = 796 (0x31c), region = 48  ;;  %748 = vmatprep.subr.bf16.mxu0 (!%p280_p10), %v906_v3  ;;  %v749_v4 = vpack.c.bf16 (!%p280_p10), %v347_v1, %v346_v0  ;;  %v349_v5 = vld [vmem:[%s1117_s1 + $0x18] sm:$0xff] (!%p280_p10)  ;;  %344 = vst.msk [vmem:[#allocation2] sm:$0xff] (!%p280_p10), %vm343_vm0, %v907_v6  ;;  %p322_p11 = scmp.lt.s32.totalorder (!%p280_p10), %s896_s27, 1  ;;  %754 = vmatprep.subr.bf16.mxu1 (!%p280_p10), %v906_v3  ;;  %v433_v7 = vld [vmem:[%s1119_s3] sm:$0xff] (!%p280_p10)  ;;  %v434_v8 = vld [vmem:[%s1119_s3 + $0x8] sm:$0xff] (!%p280_p10) }
  0x10   : > { %vm908_vm1 = vmmov (!%p280_p10), 0   ;;  %v755_v9 = vpack.c.bf16 (!%p280_p10), %v434_v8, %v433_v7  ;;  %v435_v10 = vld [vmem:[%s1119_s3 + $0x10] sm:$0xff] (!%p280_p10)  ;;  %v436_v11 = vld [vmem:[%s1119_s3 + $0x18] sm:$0xff] (!%p280_p10)  ;;  %v752_v12 = vpack.c.bf16 (!%p280_p10), %v349_v5, %v348_v2  ;;  %v437_v14 = vld [vmem:[%s1119_s3 + $0x20] sm:$0xff] (!%p280_p10)  ;;  %vm441_vm2 = vcmask (!%p280_p10), 523264   ;;  %s319_s22 = sand.u32 (!%p280_p10), 1, %s888_s25  }
  0x11   : > { %726 = vmatprep.mubr.msk.f32.mxu0 (!%p280_p10), %vm908_vm1, %v907_v6  ;;  %745 = vmatprep.mubr.msk.f32.mxu1 (!%p280_p10), %vm908_vm1, %v907_v6  ;;  %v758_v13 = vpack.c.bf16 (!%p280_p10), %v436_v11, %v435_v10  ;;  %v438_v15 = vld [vmem:[%s1119_s3 + $0x28] sm:$0xff] (!%p280_p10)  ;;  %v439_v18 = vld [vmem:[%s1119_s3 + $0x30] sm:$0xff] (!%p280_p10)  ;;  %v440_v19 = vld [vmem:[%s1119_s3 + $0x38] sm:$0xff] (!%p280_p10)  ;;  %s692_s23 = sshll.u32 (!%p280_p10), %s319_s22, 3  ;;  %s701_s15 = sshll.u32 (!%p280_p10), %s896_s27, 7 }
  0x12   : > { %750 = vmatpush3.bf16.msra.mxu0 (!%p280_p10), %v749_v4  ;;  %756 = vmatpush3.bf16.msra.mxu1 (!%p280_p10), %v755_v9  ;;  %v761_v17 = vpack.c.bf16 (!%p280_p10), %v438_v15, %v437_v14  ;;  %v764_v20 = vpack.c.bf16 (!%p280_p10), %v440_v19, %v439_v18  ;;  %v694_v21 = vld [vmem:[%s1118_s2] ss:$0 sm:$0xff] (!%p280_p10)  ;;  %s321_s16 = scalar_lea.vmem (!%p280_p10), [#allocation3], %s692_s23  ;;  %s1068_s20 = scalar_lea.hbm (!%p280_p10), %s1123_s7, %s701_s15 }
  0x13   : > { %751 = vmatprep.subr.bf16.mxu0 (!%p280_p10), %v906_v3  ;;  %757 = vmatprep.subr.bf16.mxu1 (!%p280_p10), %v906_v3  ;;  %v697_v30 = vld [vmem:[%s1120_s4] ss:$0 sm:$0xff] (!%p280_p10)  ;;  %s575_s17 = sshll.u32 (!%p280_p10), %s321_s16, 4  ;;  %s562_s21 = scalar_lea.sflag (!%p280_p10), [#allocation4], %s319_s22  ;;  %s1070_s17 = int_to_ptr.vmem [resolvable:$true] %s575_s17 }
  0x14   : > { %v698_v43 = vld [vmem:[%s1121_s5] ss:$0 sm:$0xff] (!%p280_p10)  ;;  %s826_s30 = scalar_lea.vmem (!%p280_p10), %s1070_s17, 128 }
  0x15   : > { %v699_v46 = vld [vmem:[%s1122_s6] ss:$0 sm:$0xff] (!%p280_p10)  ;;  %p827_p12 = scmp.ne.s32.totalorder (!%p280_p10), %s1070_s17, %s826_s30 }
  0x16   : > { %s323_s18 = scalar_select %p322_p11, %s896_s27, 1  ;;  %753 = vmatpush3.bf16.msra.mxu0 %v752_v12  ;;  %759 = vmatpush3.bf16.msra.mxu1 %v758_v13  ;;  %v432_v26 = vld [vmem:[#allocation2] sm:$0xff] }
  0x17   : > { %760 = vmatprep.subr.bf16.mxu1 %v906_v3  ;;  %p828_p13 = pnand %p827_p12, %p990_p4  ;;  %s909_s27 = smov [#allocation3]  }
  0x18   : > { %s693_s19 = sshll.u32 %s323_s18, 3  ;;  %s830_s23 = sshll.u32 %s909_s27, 4  ;;  %s831_s23 = int_to_ptr.vmem [resolvable:$false] %s830_s23 }
  0x19   : > { %s325_s10 = scalar_lea.vmem %s1116_s0, %s693_s19  ;;  %p829_p0 = pneg %p828_p13 }
  0x1a   : > { %v345_v16 = vld [vmem:[%s325_s10] sm:$0xff]  ;;  %762 = vmatpush3.bf16.msra.mxu1 %v761_v17  ;;  %s832_s8 = scalar_lea.vmem %s831_s23, 256  ;;  %p833_p1 = scmp.lt.s32.totalorder %s1070_s17, %s831_s23 }
  0x1b   : > { %727 = vmatmul.mubr.msk.f32.vlgmr.msra.gmra.mrb[0].mxu0 %vm343_vm0, %v345_v16  ;;  %763 = vmatprep.subr.bf16.mxu1 %v906_v3  ;;  %p834_p2 = scmp.lt.s32.totalorder %s832_s8, %s826_s30 }
  0x1d   : > { %p835_p3 = por %p834_p2, %p833_p1 }
  0x1e   : > { %765 = vmatpush3.bf16.msra.mxu1 %v764_v20 }
  0x1f   : > { %p836_p5 = pnand %p835_p3, %p829_p0 }
  0xee   : > { %v427_v22 = vpop.f32.mrb[0].mxu0 }
  0xef   : > { %v428_v23 = vadd.f32 %v694_v21, %v427_v22  ;;  %v728_v24 = vpop.f32.mrb[1].mxu0 }
  0xf1   : > { %v431_v25 = vmax.f32 %v428_v23, 0.0 }
  0xf3   : > { %746 = vmatmul.mubr.msk.f32.vlgmr.msra.gmra.mrb[0].mxu1 %vm441_vm2, %v431_v25 }
 0x1c6   : > { %v511_v27 = vpop.f32.mrb[0].mxu1 }
 0x1c7   : > { %v515_v28 = vadd.f32 %v511_v27, %v432_v26  ;;  %v747_v29 = vpop.f32.mrb[1].mxu1 }
 0x1c9   : > { %516 = vst.msk [vmem:[#allocation2] sm:$0xff] %vm343_vm0, %v515_v28 }
 0x1d0   : > { %v520_v31 = vld [vmem:[#allocation2] sm:$0xff] }
 0x1d1   : > { %v528_v32 = vadd.f32 %v697_v30, %v520_v31 }
 0x1d3   : > { %v529_v33 = vadd.f32 %v528_v32, %v345_v16 }
 0x1d5   : > { %v530_v34 = vsel %vm343_vm0, %v529_v33, 0.0 }
 0x1d6   : > { %531 = vadd.xlane.f32.xlu0 %v530_v34 }
 0x263   : > { %v532_v35 = vpop.xlane.xlu0 %531 }
 0x264   : > { %v534_v36 = vmul.f32 0.03125, %v532_v35 }
 0x266   : > { %v535_v37 = vsub.f32 %v529_v33, %v534_v36 }
 0x268   : > { %v536_v38 = vmul.f32 %v535_v37, %v535_v37 }
 0x26a   : > { %v537_v39 = vsel %vm343_vm0, %v536_v38, 0.0 }
 0x26b   : > { %538 = vadd.xlane.f32.xlu0 %v537_v39 }
 0x2f8   : > { %v539_v40 = vpop.xlane.xlu0 %538 }
 0x2f9   : > { %v540_v41 = vmul.f32 0.03125, %v539_v40 }
 0x2fb   : > { %v541_v42 = vadd.f32 1e-06, %v540_v41 }
 0x2fd   : > { %824 = vrsqrt.f32 %v541_v42 }
 0x307   : > { %v825_v44 = vpop.eup %824 }
 0x308   : > { %v550_v45 = vmul.f32 %v825_v44, %v698_v43 }
 0x30a   : > { %v551_v47 = vmul.f32 %v550_v45, %v535_v37 }
 0x30c   : > { %v559_v48 = vadd.f32 %v699_v46, %v551_v47 }
 0x30e   : > { %560 = vst.msk [vmem:[%s321_s16] sm:$0xff] %vm343_vm0, %v559_v48 }
 0x30f   : > { %839 = shalt.err (!%p836_p5)
}
 0x310   : > { %s840_s22 = scalar_lea.hbm %s1068_s20, 128  ;;  %s844_s15 = scalar_lea.hbm %s1123_s7, 256 }
 0x311   : > { %p841_p6 = scmp.ne.s32.totalorder %s1068_s20, %s840_s22  ;;  %p845_p10 = scmp.lt.u32.totalorder %s1068_s20, %s1123_s7 }
 0x312   : > { %p846_p11 = scmp.lt.u32.totalorder %s844_s15, %s840_s22  ;;  %p848_p13 = scmp.lt.u32.totalorder %s840_s22, %s1068_s20 }
 0x313   : > { %p842_p7 = pnand %p841_p6, %p990_p4 }
 0x314   : > { %p847_p12 = por %p846_p11, %p845_p10 }
 0x315   : > { %p843_p9 = pneg %p842_p7 }
 0x316   : > { %p849_p0 = por %p848_p13, %p847_p12 }
 0x318   : > { %p850_p1 = pnand %p849_p0, %p843_p9 }
 0x31a   : > { %853 = shalt.err (!%p850_p1)
}
 0x31b   : > { %766 = dma.vmem_to_hbm [thread:$0]  (%p990_p4), %s1070_s17, 128, %s1068_s20, %s562_s21  }
 0x31c PF: > { %p772_p2 = scmp.ge.s32.totalorder %s904_s29, 2  ;;  %s587_s19 = sand.u32 1, %s884_s24  }
 0x31d   : > { %s588_s30 = scalar_lea.sflag [#allocation4], %s587_s19 }
 0x31e   : > { %p769_p3 = pnand %p772_p2, %p997_p8 }
 0x320   : > { %879 = dma.done.wait (!%p769_p3), %s588_s30, 128  }
 0x321   : > { %881 = vsyncadd (!%p769_p3), %s588_s30, 4294967168  ;;  %s20_s29 = sadd.s32 1, %s904_s29   ;;  %s1126_s24 = smov %s888_s25 }
 0x322   : > { %p17_p5 = scmp.ge.s32.totalorder %s20_s29, 4   ;;  %s1127_s25 = smov %s892_s26 }
 0x323   : > { %s1128_s26 = smov %s1003_s14  ;;  %s1129_s27 = smov %s900_s28 }
 0x324   : > { %s1130_s28 = smov %s1132_s9  ;;  %19 = sbr.rel (!%p17_p5) target bundleno = 4 (0x4), region = 100 }
 0x32b   :  { %593 = vsyncpa [#allocation4], 1 }
 0x32c   :  { %595 = vsyncpa [#allocation4 + $0x1], 1 }

</bundles_post_ra>
